<compile_context>
chip_gen: v7x
topology: tpu7x:2x2x1
jax: 0.10.0
libtpu: 0.0.40
codegen_flags: <defaults>
</compile_context>

<pallas_src>
import math

import jax
import jax.numpy as jnp
from jax.experimental import pallas as pl
from jax.experimental.pallas import tpu as pltpu

NUM_LAYERS = 7          # fc0..fc6
_SUBLANE = 16           # LCM of f32 (8) and bf16 (16) sublane packing
_MIN_SPLIT_ROWS = 512   # only split the batch across tiles if each gets >=256 rows


def _mlp_kernel(x_ref, w_ref, b_ref, o_ref):
    """Fused forward: 6 x (Linear -> ReLU) + final Linear on one batch tile.

    x_ref : (B_tile, input_size)  f32   unpadded input activations
    w_ref : (7, 128, 128)         bf16  zero-padded weights, layout (in, out)
    b_ref : (7, 1, 128)           f32   zero-padded biases
    o_ref : (B_tile, 128)         bf16  padded logits (f32 accumulation inside)
    """
    d_in = x_ref.shape[-1]                      # static (e.g. 32)
    x = x_ref[...].astype(jnp.bfloat16)         # (B_tile, d_in) bf16

    # Layer 0: contract only the real input features against the matching rows
    # of the padded weight slab (the remaining slab rows are zero anyway).
    y = jnp.dot(x, w_ref[0][:d_in, :], preferred_element_type=jnp.float32)
    y = jnp.maximum(y + b_ref[0], 0.0)          # f32 bias-add + ReLU
    h = y.astype(jnp.bfloat16)                  # back to bf16 for the MXU

    # Hidden layers 1..5: Linear -> ReLU (dropout = identity in eval mode).
    for i in range(1, NUM_LAYERS - 1):
        y = jnp.dot(h, w_ref[i], preferred_element_type=jnp.float32)
        y = jnp.maximum(y + b_ref[i], 0.0)
        h = y.astype(jnp.bfloat16)

    # Final layer: Linear only (no ReLU, no dropout).
    out = jnp.dot(h, w_ref[NUM_LAYERS - 1],
                  preferred_element_type=jnp.float32) + b_ref[NUM_LAYERS - 1]
    o_ref[...] = out.astype(o_ref.dtype)        # bf16 store -> half the writeback


def _pack_params(params, pad):
    """Stack zero-padded (W, b) pairs into one bf16 weight slab + one f32 bias slab."""
    w_packed = jnp.zeros((NUM_LAYERS, pad, pad), jnp.bfloat16)
    b_packed = jnp.zeros((NUM_LAYERS, 1, pad), jnp.float32)
    for i, (w, b) in enumerate(params):
        fi, fo = w.shape
        w_packed = w_packed.at[i, :fi, :fo].set(w.astype(jnp.bfloat16))
        b_packed = b_packed.at[i, :, :fo].set(b.astype(jnp.float32))
    return w_packed, b_packed


def _pick_batch_tile(B, batch_tile):
    """Batch tile: big (amortize ~0.35us/step overhead), multiple of 16 when
    tiling, and >=2 grid steps for large B so v7x megacore shards the batch."""
    if _MIN_SPLIT_ROWS <= B <= 2 * batch_tile:
        tile = _SUBLANE * math.ceil(B / (2 * _SUBLANE))   # exactly 2 tiles
    elif B > batch_tile:
        tile = max(_SUBLANE, (batch_tile // _SUBLANE) * _SUBLANE)
    else:
        tile = B                                          # tiny batch: one block
    return B if tile >= B else tile                       # full-extent block is always legal


def mlp_forward(x, params, *, batch_tile=4096, out_dtype=jnp.bfloat16):
    """x: (B, input_size) float32.  params: list of (W, b), W:(in,out), b:(1,out)."""
    B, input_size = x.shape
    num_classes = params[-1][0].shape[1]

    # Pad every feature dim to a multiple of 128 lanes (128 for this module).
    # Note (v6e/v7x): K=N=128 under-fills the 2x256x256 MXU, but the model's
    # tiny feature dims make that unavoidable; the lever is a large batch tile.
    dims = [input_size] + [w.shape[1] for w, _ in params]
    pad = 128 * math.ceil(max(dims) / 128)

    w_packed, b_packed = _pack_params(params, pad)

    b_tile = _pick_batch_tile(B, batch_tile)
    grid_b = pl.cdiv(B, b_tile)   # uneven last block is handled by Pallas

    out_padded = pl.pallas_call(
        _mlp_kernel,
        out_shape=jax.ShapeDtypeStruct((B, pad), out_dtype),
        grid=(grid_b,),
        in_specs=[
            # batch tile of unpadded activations (full-extent last dim)
            pl.BlockSpec((b_tile, input_size), lambda i: (i, 0)),
            # packed weights / biases: constant index map -> VMEM-resident
            pl.BlockSpec(w_packed.shape, lambda i: (0, 0, 0)),
            pl.BlockSpec(b_packed.shape, lambda i: (0, 0, 0)),
        ],
        out_specs=pl.BlockSpec((b_tile, pad), lambda i: (i, 0)),
        compiler_params=pltpu.CompilerParams(
            dimension_semantics=("parallel",),   # megacore sharding on v7x
            vmem_limit_bytes=32 * 1024 * 1024,   # explicit budget; <= all chips' scoped/physical
        ),
    )(x, w_packed, b_packed)

    # Rows are already exact; only the padded lanes need slicing.  Consumers
    # that can take the padded (B, 128) logits (e.g. argmax over the first
    # num_classes lanes) can skip this and avoid the extra HBM pass.
    return out_padded[:, :num_classes]


def init_params(key, input_size, num_classes,
                hidden=(64, 128, 128, 64, 32, 16)):
    """Deterministic synthetic parameters (not a checkpoint load)."""
    sizes = [input_size] + list(hidden) + [num_classes]
    params = []
    for i in range(len(sizes) - 1):
        key, kw, kb = jax.random.split(key, 3)
        fan_in, fan_out = sizes[i], sizes[i + 1]
        bound = 1.0 / jnp.sqrt(fan_in)
        # W stored as (in, out): transpose of torch's (out, in) Linear weight.
        w = jax.random.uniform(kw, (fan_in, fan_out), jnp.float32, -bound, bound)
        b = jax.random.uniform(kb, (1, fan_out), jnp.float32, -bound, bound)
        params.append((w, b))
    return params


def mlp_reference(x, params):
    """Pure-JAX reference mirroring the kernel's dtypes (bf16 MXU, f32 accum, bf16 logits)."""
    h = x.astype(jnp.bfloat16)
    for i, (w, b) in enumerate(params):
        y = jnp.dot(h, w.astype(jnp.bfloat16),
                    preferred_element_type=jnp.float32) + b.astype(jnp.float32)
        if i < len(params) - 1:
            y = jnp.maximum(y, 0.0)
            h = y.astype(jnp.bfloat16)
        else:
            h = y.astype(jnp.bfloat16)
    return h


if __name__ == "__main__":
    key = jax.random.PRNGKey(0)
    batch = 8
    input_size = 32
    num_classes = 10

    kx, kp = jax.random.split(key)
    x = jax.random.normal(kx, (batch, input_size), jnp.float32)
    params = init_params(kp, input_size, num_classes)

    out = mlp_forward(x, params)
    out = jax.block_until_ready(out)

    ref = mlp_reference(x, params)
    assert out.shape == (batch, num_classes)
    assert jnp.allclose(out.astype(jnp.float32), ref.astype(jnp.float32),
                        atol=2e-2, rtol=2e-2), "mismatch vs reference"

    print("KERNEL_OK")
</pallas_src>

<mosaic_0001>
module attributes {stable_mosaic.version = 11 : i64} {
  func.func @_mlp_kernel(%arg0: i32, %arg1: memref<8x32xf32, #tpu.memory_space<vmem>>, %arg2: memref<7x128x128xbf16, #tpu.memory_space<vmem>>, %arg3: memref<7x1x128xf32, #tpu.memory_space<vmem>>, %arg4: memref<8x128xbf16, #tpu.memory_space<vmem>>) attributes {dimension_semantics = [#tpu.dimension_semantics<parallel>], iteration_bounds = array<i64: 1>, scalar_prefetch = 0 : i64, scratch_operands = 0 : i64, tpu.core_type = #tpu.core_type<tc>, window_params = [{transform_indices = @transform_0, window_bounds = array<i64: 8, 32>}, {pipeline_mode = #tpu.pipeline_mode<synchronous>, transform_indices = @transform_1, window_bounds = array<i64: 7, 128, 128>}, {pipeline_mode = #tpu.pipeline_mode<synchronous>, transform_indices = @transform_2, window_bounds = array<i64: 7, 1, 128>}, {transform_indices = @transform_3, window_bounds = array<i64: 8, 128>}]} {
    %c0 = arith.constant 0 : index
    %c0_0 = arith.constant 0 : index
    %0 = vector.load %arg1[%c0, %c0_0] : memref<8x32xf32, #tpu.memory_space<vmem>>, vector<8x32xf32>
    %1 = arith.truncf %0 : vector<8x32xf32> to vector<8x32xbf16>
    %c0_1 = arith.constant 0 : index
    %c0_2 = arith.constant 0 : index
    %c0_3 = arith.constant 0 : index
    %2 = vector.load %arg2[%c0_1, %c0_2, %c0_3] : memref<7x128x128xbf16, #tpu.memory_space<vmem>>, vector<1x128x128xbf16>
    %3 = vector.shape_cast %2 : vector<1x128x128xbf16> to vector<128x128xbf16>
    %4 = vector.extract_strided_slice %3 {offsets = [0, 0], sizes = [32, 128], strides = [1, 1]} : vector<128x128xbf16> to vector<32x128xbf16>
    %cst = arith.constant dense<0.000000e+00> : vector<8x128xf32>
    %5 = tpu.matmul %1, %4, %cst {dimension_numbers = #tpu.dot_dimension_numbers<[1], [0], [0], [1], [0, 0, 1, 1], [], []>} : vector<8x32xbf16>, vector<32x128xbf16>, vector<8x128xf32> -> vector<8x128xf32>
    %c0_4 = arith.constant 0 : index
    %c0_5 = arith.constant 0 : index
    %c0_6 = arith.constant 0 : index
    %6 = vector.load %arg3[%c0_4, %c0_5, %c0_6] : memref<7x1x128xf32, #tpu.memory_space<vmem>>, vector<1x1x128xf32>
    %7 = vector.shape_cast %6 : vector<1x1x128xf32> to vector<1x128xf32>
    %8 = vector.broadcast %7 : vector<1x128xf32> to vector<8x128xf32>
    %9 = arith.addf %5, %8 : vector<8x128xf32>
    %cst_7 = arith.constant 0.000000e+00 : f32
    %10 = vector.broadcast %cst_7 : f32 to vector<8x128xf32>
    %11 = arith.maximumf %9, %10 : vector<8x128xf32>
    %12 = arith.truncf %11 : vector<8x128xf32> to vector<8x128xbf16>
    %c1 = arith.constant 1 : index
    %c0_8 = arith.constant 0 : index
    %c0_9 = arith.constant 0 : index
    %13 = vector.load %arg2[%c1, %c0_8, %c0_9] : memref<7x128x128xbf16, #tpu.memory_space<vmem>>, vector<1x128x128xbf16>
    %14 = vector.shape_cast %13 : vector<1x128x128xbf16> to vector<128x128xbf16>
    %cst_10 = arith.constant dense<0.000000e+00> : vector<8x128xf32>
    %15 = tpu.matmul %12, %14, %cst_10 {dimension_numbers = #tpu.dot_dimension_numbers<[1], [0], [0], [1], [0, 0, 1, 1], [], []>} : vector<8x128xbf16>, vector<128x128xbf16>, vector<8x128xf32> -> vector<8x128xf32>
    %c1_11 = arith.constant 1 : index
    %c0_12 = arith.constant 0 : index
    %c0_13 = arith.constant 0 : index
    %16 = vector.load %arg3[%c1_11, %c0_12, %c0_13] : memref<7x1x128xf32, #tpu.memory_space<vmem>>, vector<1x1x128xf32>
    %17 = vector.shape_cast %16 : vector<1x1x128xf32> to vector<1x128xf32>
    %18 = vector.broadcast %17 : vector<1x128xf32> to vector<8x128xf32>
    %19 = arith.addf %15, %18 : vector<8x128xf32>
    %cst_14 = arith.constant 0.000000e+00 : f32
    %20 = vector.broadcast %cst_14 : f32 to vector<8x128xf32>
    %21 = arith.maximumf %19, %20 : vector<8x128xf32>
    %22 = arith.truncf %21 : vector<8x128xf32> to vector<8x128xbf16>
    %c2 = arith.constant 2 : index
    %c0_15 = arith.constant 0 : index
    %c0_16 = arith.constant 0 : index
    %23 = vector.load %arg2[%c2, %c0_15, %c0_16] : memref<7x128x128xbf16, #tpu.memory_space<vmem>>, vector<1x128x128xbf16>
    %24 = vector.shape_cast %23 : vector<1x128x128xbf16> to vector<128x128xbf16>
    %cst_17 = arith.constant dense<0.000000e+00> : vector<8x128xf32>
    %25 = tpu.matmul %22, %24, %cst_17 {dimension_numbers = #tpu.dot_dimension_numbers<[1], [0], [0], [1], [0, 0, 1, 1], [], []>} : vector<8x128xbf16>, vector<128x128xbf16>, vector<8x128xf32> -> vector<8x128xf32>
    %c2_18 = arith.constant 2 : index
    %c0_19 = arith.constant 0 : index
    %c0_20 = arith.constant 0 : index
    %26 = vector.load %arg3[%c2_18, %c0_19, %c0_20] : memref<7x1x128xf32, #tpu.memory_space<vmem>>, vector<1x1x128xf32>
    %27 = vector.shape_cast %26 : vector<1x1x128xf32> to vector<1x128xf32>
    %28 = vector.broadcast %27 : vector<1x128xf32> to vector<8x128xf32>
    %29 = arith.addf %25, %28 : vector<8x128xf32>
    %cst_21 = arith.constant 0.000000e+00 : f32
    %30 = vector.broadcast %cst_21 : f32 to vector<8x128xf32>
    %31 = arith.maximumf %29, %30 : vector<8x128xf32>
    %32 = arith.truncf %31 : vector<8x128xf32> to vector<8x128xbf16>
    %c3 = arith.constant 3 : index
    %c0_22 = arith.constant 0 : index
    %c0_23 = arith.constant 0 : index
    %33 = vector.load %arg2[%c3, %c0_22, %c0_23] : memref<7x128x128xbf16, #tpu.memory_space<vmem>>, vector<1x128x128xbf16>
    %34 = vector.shape_cast %33 : vector<1x128x128xbf16> to vector<128x128xbf16>
    %cst_24 = arith.constant dense<0.000000e+00> : vector<8x128xf32>
    %35 = tpu.matmul %32, %34, %cst_24 {dimension_numbers = #tpu.dot_dimension_numbers<[1], [0], [0], [1], [0, 0, 1, 1], [], []>} : vector<8x128xbf16>, vector<128x128xbf16>, vector<8x128xf32> -> vector<8x128xf32>
    %c3_25 = arith.constant 3 : index
    %c0_26 = arith.constant 0 : index
    %c0_27 = arith.constant 0 : index
    %36 = vector.load %arg3[%c3_25, %c0_26, %c0_27] : memref<7x1x128xf32, #tpu.memory_space<vmem>>, vector<1x1x128xf32>
    %37 = vector.shape_cast %36 : vector<1x1x128xf32> to vector<1x128xf32>
    %38 = vector.broadcast %37 : vector<1x128xf32> to vector<8x128xf32>
    %39 = arith.addf %35, %38 : vector<8x128xf32>
    %cst_28 = arith.constant 0.000000e+00 : f32
    %40 = vector.broadcast %cst_28 : f32 to vector<8x128xf32>
    %41 = arith.maximumf %39, %40 : vector<8x128xf32>
    %42 = arith.truncf %41 : vector<8x128xf32> to vector<8x128xbf16>
    %c4 = arith.constant 4 : index
    %c0_29 = arith.constant 0 : index
    %c0_30 = arith.constant 0 : index
    %43 = vector.load %arg2[%c4, %c0_29, %c0_30] : memref<7x128x128xbf16, #tpu.memory_space<vmem>>, vector<1x128x128xbf16>
    %44 = vector.shape_cast %43 : vector<1x128x128xbf16> to vector<128x128xbf16>
    %cst_31 = arith.constant dense<0.000000e+00> : vector<8x128xf32>
    %45 = tpu.matmul %42, %44, %cst_31 {dimension_numbers = #tpu.dot_dimension_numbers<[1], [0], [0], [1], [0, 0, 1, 1], [], []>} : vector<8x128xbf16>, vector<128x128xbf16>, vector<8x128xf32> -> vector<8x128xf32>
    %c4_32 = arith.constant 4 : index
    %c0_33 = arith.constant 0 : index
    %c0_34 = arith.constant 0 : index
    %46 = vector.load %arg3[%c4_32, %c0_33, %c0_34] : memref<7x1x128xf32, #tpu.memory_space<vmem>>, vector<1x1x128xf32>
    %47 = vector.shape_cast %46 : vector<1x1x128xf32> to vector<1x128xf32>
    %48 = vector.broadcast %47 : vector<1x128xf32> to vector<8x128xf32>
    %49 = arith.addf %45, %48 : vector<8x128xf32>
    %cst_35 = arith.constant 0.000000e+00 : f32
    %50 = vector.broadcast %cst_35 : f32 to vector<8x128xf32>
    %51 = arith.maximumf %49, %50 : vector<8x128xf32>
    %52 = arith.truncf %51 : vector<8x128xf32> to vector<8x128xbf16>
    %c5 = arith.constant 5 : index
    %c0_36 = arith.constant 0 : index
    %c0_37 = arith.constant 0 : index
    %53 = vector.load %arg2[%c5, %c0_36, %c0_37] : memref<7x128x128xbf16, #tpu.memory_space<vmem>>, vector<1x128x128xbf16>
    %54 = vector.shape_cast %53 : vector<1x128x128xbf16> to vector<128x128xbf16>
    %cst_38 = arith.constant dense<0.000000e+00> : vector<8x128xf32>
    %55 = tpu.matmul %52, %54, %cst_38 {dimension_numbers = #tpu.dot_dimension_numbers<[1], [0], [0], [1], [0, 0, 1, 1], [], []>} : vector<8x128xbf16>, vector<128x128xbf16>, vector<8x128xf32> -> vector<8x128xf32>
    %c5_39 = arith.constant 5 : index
    %c0_40 = arith.constant 0 : index
    %c0_41 = arith.constant 0 : index
    %56 = vector.load %arg3[%c5_39, %c0_40, %c0_41] : memref<7x1x128xf32, #tpu.memory_space<vmem>>, vector<1x1x128xf32>
    %57 = vector.shape_cast %56 : vector<1x1x128xf32> to vector<1x128xf32>
    %58 = vector.broadcast %57 : vector<1x128xf32> to vector<8x128xf32>
    %59 = arith.addf %55, %58 : vector<8x128xf32>
    %cst_42 = arith.constant 0.000000e+00 : f32
    %60 = vector.broadcast %cst_42 : f32 to vector<8x128xf32>
    %61 = arith.maximumf %59, %60 : vector<8x128xf32>
    %62 = arith.truncf %61 : vector<8x128xf32> to vector<8x128xbf16>
    %c6 = arith.constant 6 : index
    %c0_43 = arith.constant 0 : index
    %c0_44 = arith.constant 0 : index
    %63 = vector.load %arg2[%c6, %c0_43, %c0_44] : memref<7x128x128xbf16, #tpu.memory_space<vmem>>, vector<1x128x128xbf16>
    %64 = vector.shape_cast %63 : vector<1x128x128xbf16> to vector<128x128xbf16>
    %cst_45 = arith.constant dense<0.000000e+00> : vector<8x128xf32>
    %65 = tpu.matmul %62, %64, %cst_45 {dimension_numbers = #tpu.dot_dimension_numbers<[1], [0], [0], [1], [0, 0, 1, 1], [], []>} : vector<8x128xbf16>, vector<128x128xbf16>, vector<8x128xf32> -> vector<8x128xf32>
    %c6_46 = arith.constant 6 : index
    %c0_47 = arith.constant 0 : index
    %c0_48 = arith.constant 0 : index
    %66 = vector.load %arg3[%c6_46, %c0_47, %c0_48] : memref<7x1x128xf32, #tpu.memory_space<vmem>>, vector<1x1x128xf32>
    %67 = vector.shape_cast %66 : vector<1x1x128xf32> to vector<1x128xf32>
    %68 = vector.broadcast %67 : vector<1x128xf32> to vector<8x128xf32>
    %69 = arith.addf %65, %68 : vector<8x128xf32>
    %70 = arith.truncf %69 : vector<8x128xf32> to vector<8x128xbf16>
    %c0_49 = arith.constant 0 : index
    %c0_50 = arith.constant 0 : index
    %71 = vector.load %arg4[%c0_49, %c0_50] : memref<8x128xbf16, #tpu.memory_space<vmem>>, vector<8x128xbf16>
    tpu.vector_store %arg4[%c0_49, %c0_50], %70 {strides = array<i32>} : memref<8x128xbf16, #tpu.memory_space<vmem>>, vector<8x128xbf16>,
    return
  }
  func.func @transform_0(%arg0: i32) -> (i32, i32) {
    %c0_i32 = arith.constant 0 : i32
    %c0_i32_0 = arith.constant 0 : i32
    return %arg0, %c0_i32 : i32, i32
  }
  func.func @transform_1(%arg0: i32) -> (i32, i32, i32) {
    %c0_i32 = arith.constant 0 : i32
    %c0_i32_0 = arith.constant 0 : i32
    %c0_i32_1 = arith.constant 0 : i32
    %c0_i32_2 = arith.constant 0 : i32
    return %c0_i32, %c0_i32_0, %c0_i32_1 : i32, i32, i32
  }
  func.func @transform_2(%arg0: i32) -> (i32, i32, i32) {
    %c0_i32 = arith.constant 0 : i32
    %c0_i32_0 = arith.constant 0 : i32
    %c0_i32_1 = arith.constant 0 : i32
    %c0_i32_2 = arith.constant 0 : i32
    return %c0_i32, %c0_i32_0, %c0_i32_1 : i32, i32, i32
  }
  func.func @transform_3(%arg0: i32) -> (i32, i32) {
    %c0_i32 = arith.constant 0 : i32
    %c0_i32_0 = arith.constant 0 : i32
    return %arg0, %c0_i32 : i32, i32
  }
}

</mosaic_0001>

<bundles_post_ra>
// kernel: tpu_custom_call.1
= control target key start
LH: loop header
LB: loop body
LE: loop exit
PB: predicated region body
PF: predicated region fallthrough
CT: control target
= control target key end

     0   :  { %8 = vsyncpa [#allocation3], 0  ;;  %s1352_s0 = inlined_call_operand.hbm [shape: f32[8,32], index: 0, kind: input, shape index: {}]   ;;  %s1353_s1 = inlined_call_operand.hbm [shape: bf16[7,128,128], index: 1, kind: input, shape index: {}]   ;;  %s1354_s2 = inlined_call_operand.vmem [shape: f32[7,1,128], index: 2, kind: input, shape index: {}]   ;;  %s1355_s3 = inlined_call_operand.hbm [shape: bf16[8,128], index: 3, kind: output, shape index: {}]  }
   0x1   :  { %9 = vsyncpa [#allocation6], 0 }
   0x2   :  { %10 = vsyncpa [#allocation4], 0  ;;  %s1197_s12 = smov [#allocation2]   ;;  %s1198_s14 = smov [#allocation5]  }
   0x3   :  { %s17_s13 = sshll.u32 %s1197_s12, 4  ;;  %s26_s15 = sshll.u32 %s1198_s14, 4  ;;  %s18_s13 = int_to_ptr.vmem [resolvable:$true] %s17_s13  ;;  %s1224_s15 = int_to_ptr.vmem [resolvable:$true] %s26_s15 }
   0x4   :  { %s1125_s18 = scalar_lea.hbm %s1352_s0, 128 }
   0x5   :  { %p1126_p0 = scmp.ne.s32.totalorder %s1352_s0, %s1125_s18  ;;  %p1129_p1 = scmp.lt.u32.totalorder %s1125_s18, %s1352_s0 }
   0x7   :  { %p1131_p2 = pnand %p1129_p1, %p1126_p0 }
   0x9   :  { %1134 = shalt.err (!%p1131_p2)
}
   0xa   :  { %s1135_s23 = scalar_lea.vmem %s18_s13, 128  ;;  %p1140_p4 = scmp.lt.s32.totalorder %s18_s13, %s18_s13 }
   0xb   :  { %p1136_p3 = scmp.ne.s32.totalorder %s18_s13, %s1135_s23  ;;  %p1141_p5 = scmp.lt.s32.totalorder %s1135_s23, %s1135_s23 }
   0xd   :  { %p1142_p6 = por %p1141_p5, %p1140_p4 }
   0xf   :  { %p1143_p7 = pnand %p1142_p6, %p1136_p3 }
  0x11   :  { %1146 = shalt.err (!%p1143_p7)
}
  0x12   :  { %20 = dma.hbm_to_vmem [thread:$0]  %s1352_s0, 128, %s18_s13, [#allocation3]  }
  0x13   :  { %s1147_s28 = scalar_lea.hbm %s1353_s1, 7168 }
  0x14   :  { %p1148_p8 = scmp.ne.s32.totalorder %s1353_s1, %s1147_s28  ;;  %p1151_p9 = scmp.lt.u32.totalorder %s1147_s28, %s1353_s1 }
  0x16   :  { %p1153_p10 = pnand %p1151_p9, %p1148_p8 }
  0x18   :  { %1156 = shalt.err (!%p1153_p10)
}
  0x19   :  { %s1157_s6 = scalar_lea.vmem %s1224_s15, 7168  ;;  %p1162_p12 = scmp.lt.s32.totalorder %s1224_s15, %s1224_s15 }
  0x1a   :  { %p1158_p11 = scmp.ne.s32.totalorder %s1224_s15, %s1157_s6  ;;  %p1163_p13 = scmp.lt.s32.totalorder %s1157_s6, %s1157_s6 }
  0x1c   :  { %p1164_p0 = por %p1163_p13, %p1162_p12 }
  0x1e   :  { %p1165_p1 = pnand %p1164_p0, %p1158_p11 }
  0x20   :  { %1168 = shalt.err (!%p1165_p1)
}
  0x21   :  { %s1199_s0 = smov 64   ;;  %s1200_s7 = smov 4  }
  0x22   :  { %32 = dma.hbm_to_vmem [thread:$0]  %s1353_s1, 7168, %s1224_s15, [#allocation6], %s1199_s0, %s1199_s0, %s1200_s7  }
  0x23   :  { %1191 = dma.done.wait [#allocation3], 128  }
  0x24   :  { %1192 = vsyncadd [#allocation3], 4294967168 }
  0x25   :  { %1193 = dma.done.wait [#allocation6], 7168  }
  0x26   :  { %1194 = vsyncadd [#allocation6], 4294960128  ;;  %v1201_v0 = vmov 0.0   ;;  %vm1202_vm0 = vmmov 0   ;;  %v1075_v1 = vld [vmem:[#allocation5] sm:$0xff]   ;;  %v1076_v2 = vld [vmem:[#allocation5 + $0x8] sm:$0xff]  }
  0x27   :  { %940 = vmatprep.subr.bf16.mxu0 %v1201_v0  ;;  %944 = vmatprep.mubr.msk.bf16.mxu0 %vm1202_vm0, %v1201_v0  ;;  %v42_v3 = vld [vmem:[#allocation2] sm:$0xff]  ;;  %v1077_v4 = vld [vmem:[#allocation5 + $0x40] sm:$0xff]   ;;  %v1078_v6 = vld [vmem:[#allocation5 + $0x48] sm:$0xff]   ;;  %vm67_vm1 = vcmask 261120   ;;  %s1203_s23 = smov [#allocation7]  }
  0x28   :  { %948 = vmatprep.subr.bf16.mxu1 %v1201_v0  ;;  %964 = vmatprep.mubr.msk.bf16.mxu1 %vm1202_vm0, %v1201_v0  ;;  %v43_v5 = vpack.c.bf16 %v42_v3, %v42_v3  ;;  %v1079_v7 = vld [vmem:[#allocation5 + $0x50] sm:$0xff]   ;;  %v1080_v8 = vld [vmem:[#allocation5 + $0x58] sm:$0xff]   ;;  %v1081_v9 = vld [vmem:[#allocation5 + $0x60] sm:$0xff]   ;;  %s809_s24 = sshll.u32 %s1203_s23, 4  ;;  %s810_s24 = int_to_ptr.vmem [resolvable:$true] %s809_s24 }
  0x29   :  { %941 = vmatpush3.bf16.msra.mxu0 %v1075_v1  ;;  %949 = vmatpush3.bf16.msra.mxu1 %v1077_v4  ;;  %v1082_v10 = vld [vmem:[#allocation5 + $0x68] sm:$0xff]   ;;  %v1083_v11 = vld [vmem:[#allocation5 + $0x70] sm:$0xff]   ;;  %v1084_v12 = vld [vmem:[#allocation5 + $0x78] sm:$0xff]   ;;  %s1169_s25 = scalar_lea.vmem %s810_s24, 64  ;;  %p1174_p3 = scmp.lt.s32.totalorder %s810_s24, %s810_s24 }
  0x2a   :  { %942 = vmatprep.subr.bf16.mxu0 %v1201_v0  ;;  %950 = vmatprep.subr.bf16.mxu1 %v1201_v0  ;;  %v1085_v13 = vld [vmem:[#allocation5 + $0x80] sm:$0xff]   ;;  %v1086_v14 = vld [vmem:[#allocation5 + $0x88] sm:$0xff]   ;;  %v1087_v15 = vld [vmem:[#allocation5 + $0x90] sm:$0xff]   ;;  %p1170_p2 = scmp.ne.s32.totalorder %s810_s24, %s1169_s25  ;;  %p1175_p4 = scmp.lt.s32.totalorder %s1169_s25, %s1169_s25 }
  0x2b   :  { %v1088_v16 = vld [vmem:[#allocation5 + $0x98] sm:$0xff]   ;;  %v1089_v17 = vld [vmem:[#allocation5 + $0xa0] sm:$0xff]   ;;  %v1090_v18 = vld [vmem:[#allocation5 + $0xa8] sm:$0xff]  }
  0x2c   :  { %v819_v19 = vld [vmem:[%s1354_s2] ss:$0 sm:$0xff]  ;;  %v1091_v27 = vld [vmem:[#allocation5 + $0xb0] sm:$0xff]   ;;  %v1093_v29 = vld [vmem:[#allocation5 + $0xc0] sm:$0xff]   ;;  %p1176_p5 = por %p1175_p4, %p1174_p3 }
  0x2d   :  { %943 = vmatpush3.bf16.msra.mxu0 %v1076_v2  ;;  %951 = vmatpush3.bf16.msra.mxu1 %v1078_v6  ;;  %v1092_v28 = vld [vmem:[#allocation5 + $0xb8] sm:$0xff]   ;;  %v1094_v30 = vld [vmem:[#allocation5 + $0xc8] sm:$0xff]   ;;  %v1095_v31 = vld [vmem:[#allocation5 + $0xd0] sm:$0xff]  }
  0x2e   :  { %968 = vmatprep.subr.bf16.mxu0 %v1201_v0  ;;  %952 = vmatprep.subr.bf16.mxu1 %v1201_v0  ;;  %v1096_v32 = vld [vmem:[#allocation5 + $0xd8] sm:$0xff]   ;;  %v1097_v33 = vld [vmem:[#allocation5 + $0xe0] sm:$0xff]   ;;  %v1098_v34 = vld [vmem:[#allocation5 + $0xe8] sm:$0xff]   ;;  %p1177_p6 = pnand %p1176_p5, %p1170_p2 }
  0x2f   :  { %v824_v35 = vld [vmem:[%s1354_s2 + $0x1] ss:$0 sm:$0xff]  ;;  %v1099_v43 = vld [vmem:[#allocation5 + $0xf0] sm:$0xff]   ;;  %v1101_v45 = vld [vmem:[#allocation5 + $0x100] sm:$0xff]  }
  0x30   :  { %945 = vmatmul.mubr.msk.bf16.vlgmr.msra.gmra.mrb[0].mxu0 %vm67_vm1, %v43_v5  ;;  %v1100_v44 = vld [vmem:[#allocation5 + $0xf8] sm:$0xff]   ;;  %v1102_v46 = vld [vmem:[#allocation5 + $0x108] sm:$0xff]   ;;  %v1103_v47 = vld [vmem:[#allocation5 + $0x110] sm:$0xff]  }
  0x31   :  { %984 = vmatprep.mubr.msk.bf16.mxu0 %vm1202_vm0, %v1201_v0  ;;  %953 = vmatpush3.bf16.msra.mxu1 %v1079_v7  ;;  %v1104_v48 = vld [vmem:[#allocation5 + $0x118] sm:$0xff]   ;;  %v1105_v49 = vld [vmem:[#allocation5 + $0x120] sm:$0xff]   ;;  %v1106_v50 = vld [vmem:[#allocation5 + $0x128] sm:$0xff]  }
  0x32   :  { %954 = vmatprep.subr.bf16.mxu1 %v1201_v0  ;;  %969 = vmatpush3.bf16.msra.mxu0 %v1085_v13  ;;  %v834_v51 = vld [vmem:[%s1354_s2 + $0x2] ss:$0 sm:$0xff]  ;;  %v1107_v59 = vld [vmem:[#allocation5 + $0x130] sm:$0xff]   ;;  %v1109_v61 = vld [vmem:[#allocation5 + $0x140] sm:$0xff]  }
  0x33   :  { %970 = vmatprep.subr.bf16.mxu0 %v1201_v0  ;;  %v1108_v60 = vld [vmem:[#allocation5 + $0x138] sm:$0xff]   ;;  %v1110_v62 = vld [vmem:[#allocation5 + $0x148] sm:$0xff]   ;;  %v1111_v63 = vld [vmem:[#allocation5 + $0x150] sm:$0xff]  }
  0x34   :  { %v1112_v1 = vld [vmem:[#allocation5 + $0x158] sm:$0xff]   ;;  %v1113_v2 = vld [vmem:[#allocation5 + $0x160] sm:$0xff]   ;;  %v1114_v3 = vld [vmem:[#allocation5 + $0x168] sm:$0xff]  }
  0x35   :  { %955 = vmatpush3.bf16.msra.mxu1 %v1080_v8  ;;  %v844_v4 = vld [vmem:[%s1354_s2 + $0x3] ss:$0 sm:$0xff] }
  0x36   :  { %956 = vmatprep.subr.bf16.mxu1 %v1201_v0  ;;  %971 = vmatpush3.bf16.msra.mxu0 %v1086_v14  ;;  %v1116_v13 = vld [vmem:[#allocation5 + $0x178] sm:$0xff]   ;;  %v1117_v14 = vld [vmem:[#allocation5 + $0x180] sm:$0xff]  }
  0x37   :  { %972 = vmatprep.subr.bf16.mxu0 %v1201_v0 }
  0x39   :  { %957 = vmatpush3.bf16.msra.mxu1 %v1081_v9 }
  0x3a   :  { %958 = vmatprep.subr.bf16.mxu1 %v1201_v0  ;;  %973 = vmatpush3.bf16.msra.mxu0 %v1087_v15  ;;  %v1118_v15 = vld [vmem:[#allocation5 + $0x188] sm:$0xff]  }
  0x3b   :  { %974 = vmatprep.subr.bf16.mxu0 %v1201_v0 }
  0x3d   :  { %959 = vmatpush3.bf16.msra.mxu1 %v1082_v10 }
  0x3e   :  { %960 = vmatprep.subr.bf16.mxu1 %v1201_v0  ;;  %975 = vmatpush3.bf16.msra.mxu0 %v1088_v16  ;;  %v1119_v16 = vld [vmem:[#allocation5 + $0x190] sm:$0xff]  }
  0x3f   :  { %976 = vmatprep.subr.bf16.mxu0 %v1201_v0 }
  0x41   :  { %961 = vmatpush3.bf16.msra.mxu1 %v1083_v11 }
  0x42   :  { %962 = vmatprep.subr.bf16.mxu1 %v1201_v0  ;;  %977 = vmatpush3.bf16.msra.mxu0 %v1089_v17  ;;  %v1120_v17 = vld [vmem:[#allocation5 + $0x198] sm:$0xff]  }
  0x43   :  { %978 = vmatprep.subr.bf16.mxu0 %v1201_v0 }
  0x45   :  { %963 = vmatpush3.bf16.msra.mxu1 %v1084_v12  ;;  %v1115_v12 = vld [vmem:[#allocation5 + $0x170] sm:$0xff]  }
  0x46   :  { %988 = vmatprep.subr.bf16.mxu1 %v1201_v0  ;;  %979 = vmatpush3.bf16.msra.mxu0 %v1090_v18  ;;  %v1121_v18 = vld [vmem:[#allocation5 + $0x1a0] sm:$0xff]  }
  0x47   :  { %980 = vmatprep.subr.bf16.mxu0 %v1201_v0 }
  0x4a   :  { %981 = vmatpush3.bf16.msra.mxu0 %v1091_v27 }
  0x4b   :  { %982 = vmatprep.subr.bf16.mxu0 %v1201_v0 }
  0x4e   :  { %983 = vmatpush3.bf16.msra.mxu0 %v1092_v28  ;;  %v1123_v28 = vld [vmem:[#allocation5 + $0x1b0] sm:$0xff]  }
  0x4f   :  { %1008 = vmatprep.subr.bf16.mxu0 %v1201_v0 }
 0x103   :  { %v105_v20 = vpop.f32.mrb[0].mxu0 }
 0x104   :  { %v106_v21 = vadd.f32 %v819_v19, %v105_v20  ;;  %v946_v22 = vpop.f32.mrb[1].mxu0  ;;  %v1122_v19 = vld [vmem:[#allocation5 + $0x1a8] sm:$0xff]   ;;  %v854_v20 = vld [vmem:[%s1354_s2 + $0x4] ss:$0 sm:$0xff] }
 0x105   :  { %v108_v23 = vpop.f32.mrb[2].mxu0 }
 0x106   :  { %v111_v24 = vmax.f32 %v106_v21, 0.0  ;;  %v947_v25 = vpop.f32.mrb[3].mxu0 }
 0x108   :  { %v112_v26 = vpack.c.bf16 %v111_v24, %v111_v24 }
 0x10a   :  { %965 = vmatmul.mubr.bf16.vlgmr.msra.gmra.mrb[0].mxu1 %v112_v26 }
 0x10b   :  { %1004 = vmatprep.mubr.msk.bf16.mxu1 %vm1202_vm0, %v1201_v0  ;;  %989 = vmatpush3.bf16.msra.mxu1 %v1093_v29  ;;  %v1124_v29 = vld [vmem:[#allocation5 + $0x1b8] sm:$0xff]  }
 0x10c   :  { %990 = vmatprep.subr.bf16.mxu1 %v1201_v0 }
 0x10f   :  { %991 = vmatpush3.bf16.msra.mxu1 %v1094_v30  ;;  %v864_v30 = vld [vmem:[%s1354_s2 + $0x5] ss:$0 sm:$0xff] }
 0x110   :  { %992 = vmatprep.subr.bf16.mxu1 %v1201_v0 }
 0x113   :  { %993 = vmatpush3.bf16.msra.mxu1 %v1095_v31 }
 0x114   :  { %994 = vmatprep.subr.bf16.mxu1 %v1201_v0 }
 0x117   :  { %995 = vmatpush3.bf16.msra.mxu1 %v1096_v32 }
 0x118   :  { %996 = vmatprep.subr.bf16.mxu1 %v1201_v0 }
 0x11b   :  { %997 = vmatpush3.bf16.msra.mxu1 %v1097_v33 }
 0x11c   :  { %998 = vmatprep.subr.bf16.mxu1 %v1201_v0 }
 0x11f   :  { %999 = vmatpush3.bf16.msra.mxu1 %v1098_v34 }
 0x120   :  { %1000 = vmatprep.subr.bf16.mxu1 %v1201_v0 }
 0x123   :  { %1001 = vmatpush3.bf16.msra.mxu1 %v1099_v43 }
 0x124   :  { %1002 = vmatprep.subr.bf16.mxu1 %v1201_v0 }
 0x127   :  { %1003 = vmatpush3.bf16.msra.mxu1 %v1100_v44 }
 0x128   :  { %1028 = vmatprep.subr.bf16.mxu1 %v1201_v0 }
 0x1dd   :  { %v220_v36 = vpop.f32.mrb[0].mxu1 }
 0x1de   :  { %v221_v37 = vadd.f32 %v824_v35, %v220_v36  ;;  %v966_v38 = vpop.f32.mrb[1].mxu1 }
 0x1df   :  { %v223_v39 = vpop.f32.mrb[2].mxu1  ;;  %v874_v38 = vld [vmem:[%s1354_s2 + $0x6] ss:$0 sm:$0xff] }
 0x1e0   :  { %v226_v40 = vmax.f32 %v221_v37, 0.0  ;;  %v967_v41 = vpop.f32.mrb[3].mxu1 }
 0x1e2   :  { %v227_v42 = vpack.c.bf16 %v226_v40, %v226_v40 }
 0x1e4   :  { %985 = vmatmul.mubr.bf16.vlgmr.msra.gmra.mrb[4].mxu0 %v227_v42 }
 0x1e5   :  { %1024 = vmatprep.mubr.msk.bf16.mxu0 %vm1202_vm0, %v1201_v0  ;;  %1009 = vmatpush3.bf16.msra.mxu0 %v1101_v45 }
 0x1e6   :  { %1010 = vmatprep.subr.bf16.mxu0 %v1201_v0 }
 0x1e9   :  { %1011 = vmatpush3.bf16.msra.mxu0 %v1102_v46 }
 0x1ea   :  { %1012 = vmatprep.subr.bf16.mxu0 %v1201_v0 }
 0x1ed   :  { %1013 = vmatpush3.bf16.msra.mxu0 %v1103_v47 }
 0x1ee   :  { %1014 = vmatprep.subr.bf16.mxu0 %v1201_v0 }
 0x1f1   :  { %1015 = vmatpush3.bf16.msra.mxu0 %v1104_v48 }
 0x1f2   :  { %1016 = vmatprep.subr.bf16.mxu0 %v1201_v0 }
 0x1f5   :  { %1017 = vmatpush3.bf16.msra.mxu0 %v1105_v49 }
 0x1f6   :  { %1018 = vmatprep.subr.bf16.mxu0 %v1201_v0 }
 0x1f9   :  { %1019 = vmatpush3.bf16.msra.mxu0 %v1106_v50 }
 0x1fa   :  { %1020 = vmatprep.subr.bf16.mxu0 %v1201_v0 }
 0x1fd   :  { %1021 = vmatpush3.bf16.msra.mxu0 %v1107_v59 }
 0x1fe   :  { %1022 = vmatprep.subr.bf16.mxu0 %v1201_v0 }
 0x201   :  { %1023 = vmatpush3.bf16.msra.mxu0 %v1108_v60 }
 0x202   :  { %1048 = vmatprep.subr.bf16.mxu0 %v1201_v0 }
 0x2b7   :  { %v335_v52 = vpop.f32.mrb[4].mxu0 }
 0x2b8   :  { %v336_v53 = vadd.f32 %v834_v51, %v335_v52  ;;  %v986_v54 = vpop.f32.mrb[5].mxu0 }
 0x2b9   :  { %v338_v55 = vpop.f32.mrb[6].mxu0 }
 0x2ba   :  { %v341_v56 = vmax.f32 %v336_v53, 0.0  ;;  %v987_v57 = vpop.f32.mrb[7].mxu0 }
 0x2bc   :  { %v342_v58 = vpack.c.bf16 %v341_v56, %v341_v56 }
 0x2be   :  { %1005 = vmatmul.mubr.bf16.vlgmr.msra.gmra.mrb[4].mxu1 %v342_v58 }
 0x2bf   :  { %1044 = vmatprep.mubr.msk.bf16.mxu1 %vm1202_vm0, %v1201_v0  ;;  %1029 = vmatpush3.bf16.msra.mxu1 %v1109_v61 }
 0x2c0   :  { %1030 = vmatprep.subr.bf16.mxu1 %v1201_v0 }
 0x2c3   :  { %1031 = vmatpush3.bf16.msra.mxu1 %v1110_v62 }
 0x2c4   :  { %1032 = vmatprep.subr.bf16.mxu1 %v1201_v0 }
 0x2c7   :  { %1033 = vmatpush3.bf16.msra.mxu1 %v1111_v63 }
 0x2c8   :  { %1034 = vmatprep.subr.bf16.mxu1 %v1201_v0 }
 0x2cb   :  { %1035 = vmatpush3.bf16.msra.mxu1 %v1112_v1 }
 0x2cc   :  { %1036 = vmatprep.subr.bf16.mxu1 %v1201_v0 }
 0x2cf   :  { %1037 = vmatpush3.bf16.msra.mxu1 %v1113_v2 }
 0x2d0   :  { %1038 = vmatprep.subr.bf16.mxu1 %v1201_v0 }
 0x2d3   :  { %1039 = vmatpush3.bf16.msra.mxu1 %v1114_v3 }
 0x2d4   :  { %1040 = vmatprep.subr.bf16.mxu1 %v1201_v0 }
 0x2d7   :  { %1041 = vmatpush3.bf16.msra.mxu1 %v1115_v12 }
 0x2d8   :  { %1042 = vmatprep.subr.bf16.mxu1 %v1201_v0 }
 0x2db   :  { %1043 = vmatpush3.bf16.msra.mxu1 %v1116_v13 }
 0x391   :  { %v450_v5 = vpop.f32.mrb[4].mxu1 }
 0x392   :  { %v451_v6 = vadd.f32 %v844_v4, %v450_v5  ;;  %v1006_v7 = vpop.f32.mrb[5].mxu1 }
 0x393   :  { %v453_v8 = vpop.f32.mrb[6].mxu1 }
 0x394   :  { %v456_v9 = vmax.f32 %v451_v6, 0.0  ;;  %v1007_v10 = vpop.f32.mrb[7].mxu1 }
 0x396   :  { %v457_v11 = vpack.c.bf16 %v456_v9, %v456_v9 }
 0x398   :  { %1025 = vmatmul.mubr.bf16.vlgmr.msra.gmra.mrb[8].mxu0 %v457_v11 }
 0x399   :  { %1064 = vmatprep.mubr.msk.bf16.mxu0 %vm1202_vm0, %v1201_v0  ;;  %1049 = vmatpush3.bf16.msra.mxu0 %v1117_v14 }
 0x39a   :  { %1050 = vmatprep.subr.bf16.mxu0 %v1201_v0 }
 0x39d   :  { %1051 = vmatpush3.bf16.msra.mxu0 %v1118_v15 }
 0x39e   :  { %1052 = vmatprep.subr.bf16.mxu0 %v1201_v0 }
 0x3a1   :  { %1053 = vmatpush3.bf16.msra.mxu0 %v1119_v16 }
 0x3a2   :  { %1054 = vmatprep.subr.bf16.mxu0 %v1201_v0 }
 0x3a5   :  { %1055 = vmatpush3.bf16.msra.mxu0 %v1120_v17 }
 0x3a6   :  { %1056 = vmatprep.subr.bf16.mxu0 %v1201_v0 }
 0x3a9   :  { %1057 = vmatpush3.bf16.msra.mxu0 %v1121_v18 }
 0x3aa   :  { %1058 = vmatprep.subr.bf16.mxu0 %v1201_v0 }
 0x3ad   :  { %1059 = vmatpush3.bf16.msra.mxu0 %v1122_v19 }
 0x3ae   :  { %1060 = vmatprep.subr.bf16.mxu0 %v1201_v0 }
 0x3b1   :  { %1061 = vmatpush3.bf16.msra.mxu0 %v1123_v28 }
 0x3b2   :  { %1062 = vmatprep.subr.bf16.mxu0 %v1201_v0 }
 0x3b5   :  { %1063 = vmatpush3.bf16.msra.mxu0 %v1124_v29 }
 0x46b   :  { %v565_v21 = vpop.f32.mrb[8].mxu0 }
 0x46c   :  { %v566_v22 = vadd.f32 %v854_v20, %v565_v21  ;;  %v1026_v23 = vpop.f32.mrb[9].mxu0 }
 0x46d   :  { %v568_v24 = vpop.f32.mrb[10].mxu0 }
 0x46e   :  { %v571_v25 = vmax.f32 %v566_v22, 0.0  ;;  %v1027_v26 = vpop.f32.mrb[11].mxu0 }
 0x470   :  { %v572_v27 = vpack.c.bf16 %v571_v25, %v571_v25 }
 0x472   :  { %1045 = vmatmul.mubr.bf16.vlgmr.msra.gmra.mrb[8].mxu1 %v572_v27 }
 0x545   :  { %v680_v31 = vpop.f32.mrb[8].mxu1 }
 0x546   :  { %v681_v32 = vadd.f32 %v864_v30, %v680_v31  ;;  %v1046_v33 = vpop.f32.mrb[9].mxu1 }
 0x547   :  { %v683_v34 = vpop.f32.mrb[10].mxu1 }
 0x548   :  { %v686_v35 = vmax.f32 %v681_v32, 0.0  ;;  %v1047_v36 = vpop.f32.mrb[11].mxu1 }
 0x54a   :  { %v687_v37 = vpack.c.bf16 %v686_v35, %v686_v35 }
 0x54c   :  { %1065 = vmatmul.mubr.bf16.vlgmr.msra.gmra.mrb[12].mxu0 %v687_v37 }
 0x61f   :  { %v795_v39 = vpop.f32.mrb[12].mxu0 }
 0x620   :  { %v796_v0 = vadd.f32 %v874_v38, %v795_v39  ;;  %v1066_v40 = vpop.f32.mrb[13].mxu0 }
 0x621   :  { %v798_v41 = vpop.f32.mrb[14].mxu0 }
 0x622   :  { %v801_v42 = vpack.c.bf16 %v796_v0, %v796_v0  ;;  %v1067_v43 = vpop.f32.mrb[15].mxu0 }
 0x624   :  { %802 = vst [vmem:[#allocation7] sm:$0xf] %v801_v42 }
 0x625   :  { %1180 = shalt.err (!%p1177_p6)
}
 0x626   :  { %s1181_s2 = scalar_lea.hbm %s1355_s3, 64 }
 0x627   :  { %p1182_p7 = scmp.ne.s32.totalorder %s1355_s3, %s1181_s2  ;;  %p1185_p8 = scmp.lt.u32.totalorder %s1181_s2, %s1355_s3 }
 0x629   :  { %p1187_p9 = pnand %p1185_p8, %p1182_p7 }
 0x62b   :  { %1190 = shalt.err (!%p1187_p9)
}
 0x62c   :  { %812 = dma.vmem_to_hbm [thread:$0]  %s810_s24, 64, %s1355_s3, [#allocation4]  }
 0x62d   :  { %1195 = dma.done.wait [#allocation4], 64  }
 0x62e   :  { %1196 = vsyncadd [#allocation4], 4294967232 }
 0x62f   :  { %816 = vsyncpa [#allocation3], 1 }
 0x630   :  { %817 = vsyncpa [#allocation6], 1 }
 0x631   :  { %818 = vsyncpa [#allocation4], 1 }

</bundles_post_ra>
